<compile_context>
chip_gen: v5e
topology: v5e:2x2
jax: 0.10.0
libtpu: 0.0.40
codegen_flags: <defaults>
</compile_context>

<pallas_src>
import jax
import jax.numpy as jnp
from jax.experimental import pallas as pl
from jax.experimental.pallas import tpu as pltpu

# f32 vreg tile is (8 sublanes, 128 lanes) -> pad everything to one tile.
SUB = 8      # padded batch rows
LANE = 128   # padded feature dim (covers 10 / 20 / 10 / 1)

# Logical layer sizes.
D_IN, D_H1, D_H2, D_OUT = 10, 20, 10, 1


def mlp_kernel(x_ref, w_ref, o_ref):
    """Whole 3-layer MLP in one kernel invocation.

    x_ref : (SUB, LANE) f32      rows 0..B-1 hold x, column D_IN holds 1.0
                                 (ones column -> biases fold into the matmuls).
    w_ref : (3, LANE, LANE) bf16 packed, padded, bias-augmented weights.
    o_ref : (SUB, LANE) f32      lane-dense output slab; column 0 is the result.
    """
    h = x_ref[...]
    # layer 1 + ReLU (bias comes from the bias row of w_ref[0]; the same row
    # re-injects the 1.0 into column D_H1 so layer 2's bias folds in too).
    h = jnp.maximum(
        jnp.dot(h.astype(jnp.bfloat16), w_ref[0],
                preferred_element_type=jnp.float32), 0.0)
    # layer 2 + ReLU
    h = jnp.maximum(
        jnp.dot(h.astype(jnp.bfloat16), w_ref[1],
                preferred_element_type=jnp.float32), 0.0)
    # output layer (no activation); full unmasked (8,128) store.
    o_ref[...] = jnp.dot(h.astype(jnp.bfloat16), w_ref[2],
                         preferred_element_type=jnp.float32)


def pack_params(params):
    """One-time packing of (w1,b1,w2,b2,w3,b3) into a single bf16 (3,LANE,LANE) blob.

    Slice l is an augmented weight: rows [0:K) hold W_l (already (in,out)
    layout, i.e. the PyTorch nn.Linear weight transposed), row K holds b_l,
    and for the first two layers that row also puts a 1.0 into column N so the
    ones column survives ReLU and reaches the next layer (bias folding with
    zero in-kernel concat/relayout work).
    """
    w1, b1, w2, b2, w3, b3 = params
    wp = jnp.zeros((3, LANE, LANE), jnp.float32)
    # layer 1: 10 -> 20
    wp = wp.at[0, :D_IN, :D_H1].set(w1)
    wp = wp.at[0, D_IN, :D_H1].set(b1)
    wp = wp.at[0, D_IN, D_H1].set(1.0)      # carry ones column forward
    # layer 2: 20 -> 10
    wp = wp.at[1, :D_H1, :D_H2].set(w2)
    wp = wp.at[1, D_H1, :D_H2].set(b2)
    wp = wp.at[1, D_H1, D_H2].set(1.0)      # carry ones column forward
    # output layer: 10 -> 1
    wp = wp.at[2, :D_H2, :D_OUT].set(w3)
    wp = wp.at[2, D_H2, :D_OUT].set(b3)
    return wp.astype(jnp.bfloat16)          # halves the weight DMA bytes


@jax.jit
def manual_model_forward(x, packed_w):
    B = x.shape[0]
    # Lane-dense (8,128)-aligned input slab with the ones column for bias
    # folding.  With allow_input_fusion on operand 0 this padding fuses into
    # the custom call instead of materializing in HBM as its own dispatch.
    xp = jnp.zeros((SUB, LANE), jnp.float32)
    xp = xp.at[:B, :D_IN].set(x)
    xp = xp.at[:B, D_IN].set(1.0)

    vmem = pl.BlockSpec(memory_space=pltpu.MemorySpace.VMEM)
    cost = pl.CostEstimate(
        flops=3 * 2 * SUB * LANE * LANE,             # 3 (8,128)x(128,128) matmuls
        transcendentals=0,
        bytes_accessed=SUB * LANE * 4                # x slab (f32)
        + 3 * LANE * LANE * 2                        # packed weights (bf16)
        + SUB * LANE * 4,                            # out slab (f32)
    )
    out_slab = pl.pallas_call(
        mlp_kernel,
        out_shape=jax.ShapeDtypeStruct((SUB, LANE), jnp.float32),
        in_specs=[vmem, vmem],
        out_specs=vmem,
        compiler_params=pltpu.CompilerParams(
            allow_input_fusion=[True, False],        # fuse xp-prep into operand 0
        ),
        cost_estimate=cost,
    )(xp, packed_w)
    # Slice stays inside this jit region; padded rows/cols carry bias-only
    # garbage by construction, never consume the raw slab.
    return out_slab[:B, :D_OUT]


def init_params(key):
    """Deterministic init mirroring nn.Linear defaults (U(-1/sqrt(fan_in), +))."""
    def linear(k, fan_in, fan_out):
        kw, kb = jax.random.split(k)
        bound = 1.0 / jnp.sqrt(fan_in)
        # weight stored as (in, out) == PyTorch weight (out, in) transposed
        w = jax.random.uniform(kw, (fan_in, fan_out), jnp.float32, -bound, bound)
        b = jax.random.uniform(kb, (fan_out,), jnp.float32, -bound, bound)
        return w, b

    k1, k2, k3 = jax.random.split(key, 3)
    w1, b1 = linear(k1, 10, 20)   # linear1: Linear(10, 20)
    w2, b2 = linear(k2, 20, 10)   # linear2: Linear(20, 10)
    w3, b3 = linear(k3, 10, 1)    # output : Linear(10, 1)
    return (w1, b1, w2, b2, w3, b3)


if __name__ == "__main__":
    key = jax.random.PRNGKey(0)
    kx, kp = jax.random.split(key)

    # matches the module's usage: x = torch.randn(3, 10)
    x = jax.random.normal(kx, (3, 10), dtype=jnp.float32)
    params = init_params(kp)
    packed_w = pack_params(params)          # one-time packing/padding (bf16)

    out = manual_model_forward(x, packed_w)
    out = jax.block_until_ready(out)

    # cross-check against a plain-JAX f32 reference of the same forward pass;
    # tolerance loosened because weights/activations feed the MXU as bf16.
    w1, b1, w2, b2, w3, b3 = params
    ref = jnp.maximum(x @ w1 + b1, 0.0)
    ref = jnp.maximum(ref @ w2 + b2, 0.0)
    ref = ref @ w3 + b3
    assert out.shape == (3, 1), out.shape
    assert jnp.allclose(out, ref, atol=3e-2, rtol=3e-2), (out, ref)

    print("KERNEL_OK")
</pallas_src>

<mosaic_0001>
module attributes {stable_mosaic.version = 11 : i64} {
  func.func @mlp_kernel(%arg0: memref<8x128xf32, #tpu.memory_space<vmem>>, %arg1: memref<3x128x128xbf16, #tpu.memory_space<vmem>>, %arg2: memref<8x128xf32, #tpu.memory_space<vmem>>) attributes {dimension_semantics = [], scalar_prefetch = 0 : i64, scratch_operands = 0 : i64, tpu.core_type = #tpu.core_type<tc>} {
    %c0 = arith.constant 0 : index
    %c0_0 = arith.constant 0 : index
    %0 = vector.load %arg0[%c0, %c0_0] : memref<8x128xf32, #tpu.memory_space<vmem>>, vector<8x128xf32>
    %1 = arith.truncf %0 : vector<8x128xf32> to vector<8x128xbf16>
    %c0_1 = arith.constant 0 : index
    %c0_2 = arith.constant 0 : index
    %c0_3 = arith.constant 0 : index
    %2 = vector.load %arg1[%c0_1, %c0_2, %c0_3] : memref<3x128x128xbf16, #tpu.memory_space<vmem>>, vector<1x128x128xbf16>
    %3 = vector.shape_cast %2 : vector<1x128x128xbf16> to vector<128x128xbf16>
    %cst = arith.constant dense<0.000000e+00> : vector<8x128xf32>
    %4 = tpu.matmul %1, %3, %cst {dimension_numbers = #tpu.dot_dimension_numbers<[1], [0], [0], [1], [0, 0, 1, 1], [], []>} : vector<8x128xbf16>, vector<128x128xbf16>, vector<8x128xf32> -> vector<8x128xf32>
    %cst_4 = arith.constant 0.000000e+00 : f32
    %5 = vector.broadcast %cst_4 : f32 to vector<8x128xf32>
    %6 = arith.maximumf %4, %5 : vector<8x128xf32>
    %7 = arith.truncf %6 : vector<8x128xf32> to vector<8x128xbf16>
    %c1 = arith.constant 1 : index
    %c0_5 = arith.constant 0 : index
    %c0_6 = arith.constant 0 : index
    %8 = vector.load %arg1[%c1, %c0_5, %c0_6] : memref<3x128x128xbf16, #tpu.memory_space<vmem>>, vector<1x128x128xbf16>
    %9 = vector.shape_cast %8 : vector<1x128x128xbf16> to vector<128x128xbf16>
    %cst_7 = arith.constant dense<0.000000e+00> : vector<8x128xf32>
    %10 = tpu.matmul %7, %9, %cst_7 {dimension_numbers = #tpu.dot_dimension_numbers<[1], [0], [0], [1], [0, 0, 1, 1], [], []>} : vector<8x128xbf16>, vector<128x128xbf16>, vector<8x128xf32> -> vector<8x128xf32>
    %cst_8 = arith.constant 0.000000e+00 : f32
    %11 = vector.broadcast %cst_8 : f32 to vector<8x128xf32>
    %12 = arith.maximumf %10, %11 : vector<8x128xf32>
    %13 = arith.truncf %12 : vector<8x128xf32> to vector<8x128xbf16>
    %c2 = arith.constant 2 : index
    %c0_9 = arith.constant 0 : index
    %c0_10 = arith.constant 0 : index
    %14 = vector.load %arg1[%c2, %c0_9, %c0_10] : memref<3x128x128xbf16, #tpu.memory_space<vmem>>, vector<1x128x128xbf16>
    %15 = vector.shape_cast %14 : vector<1x128x128xbf16> to vector<128x128xbf16>
    %cst_11 = arith.constant dense<0.000000e+00> : vector<8x128xf32>
    %16 = tpu.matmul %13, %15, %cst_11 {dimension_numbers = #tpu.dot_dimension_numbers<[1], [0], [0], [1], [0, 0, 1, 1], [], []>} : vector<8x128xbf16>, vector<128x128xbf16>, vector<8x128xf32> -> vector<8x128xf32>
    %c0_12 = arith.constant 0 : index
    %c0_13 = arith.constant 0 : index
    %17 = vector.load %arg2[%c0_12, %c0_13] : memref<8x128xf32, #tpu.memory_space<vmem>>, vector<8x128xf32>
    tpu.vector_store %arg2[%c0_12, %c0_13], %16 {strides = array<i32>} : memref<8x128xf32, #tpu.memory_space<vmem>>, vector<8x128xf32>,
    return
  }
}

</mosaic_0001>

<bundles_post_ra>
// kernel: manual_model_forward.1
= control target key start
LH: loop header
LB: loop body
LE: loop exit
PB: predicated region body
PF: predicated region fallthrough
CT: control target
= control target key end

     0   :  { %7 = vsyncpa [#allocation3], 0  ;;  %s421_s12 = smov [#allocation2]   ;;  %s422_s14 = smov 64   ;;  %s448_s0 = inlined_call_operand.vmem [shape: f32[8,128], index: 0, kind: input, shape index: {}]   ;;  %s449_s1 = inlined_call_operand.hbm [shape: bf16[3,128,128], index: 1, kind: input, shape index: {}]   ;;  %s450_s2 = inlined_call_operand.vmem [shape: f32[8,128], index: 2, kind: output, shape index: {}]  }
   0x1   :  { %s14_s11 = sshll.u32 %s449_s1, 4  ;;  %s16_s13 = sshll.u32 %s421_s12, 4  ;;  %s15_s11 = int_to_ptr.hbm [resolvable:$true] %s14_s11  ;;  %s17_s13 = int_to_ptr.vmem [resolvable:$true] %s16_s13 }
   0x2   :  { %s423_s15 = smov 4  }
   0x3   :  { %22 = dma.hbm_to_vmem [thread:$0]  %s15_s11, 3072, %s17_s13, [#allocation3], %s422_s14, %s422_s14, %s423_s15  }
   0x4   :  { %419 = dma.done.wait [#allocation3], 3072  }
   0x5   :  { %420 = vsyncadd [#allocation3], 4294964224  ;;  %v375_v0 = vld [vmem:[#allocation2 + $0x38] sm:$0xff]  ;;  %v374_v1 = vld [vmem:[#allocation2 + $0x30] sm:$0xff] }
   0x6   :  { %93 = vmatpush.bf16.msra.mxu0 %v375_v0  ;;  %v383_v2 = vld [vmem:[#allocation2 + $0x78] sm:$0xff]  ;;  %v382_v3 = vld [vmem:[#allocation2 + $0x70] sm:$0xff]  ;;  %v373_v4 = vld [vmem:[#allocation2 + $0x28] sm:$0xff] }
   0x7   :  { %173 = vmatpush.bf16.msra.mxu1 %v383_v2  ;;  %v381_v5 = vld [vmem:[#allocation2 + $0x68] sm:$0xff]  ;;  %v372_v6 = vld [vmem:[#allocation2 + $0x20] sm:$0xff]  ;;  %v371_v8 = vld [vmem:[#allocation2 + $0x18] sm:$0xff] }
   0x8   :  { %v380_v7 = vld [vmem:[#allocation2 + $0x60] sm:$0xff]  ;;  %v379_v9 = vld [vmem:[#allocation2 + $0x58] sm:$0xff]  ;;  %v370_v10 = vld [vmem:[#allocation2 + $0x10] sm:$0xff] }
   0x9   :  { %v378_v11 = vld [vmem:[#allocation2 + $0x50] sm:$0xff]  ;;  %v369_v12 = vld [vmem:[#allocation2 + $0x8] sm:$0xff]  ;;  %v368_v14 = vld [vmem:[#allocation2] sm:$0xff] }
   0xa   :  { %94 = vmatpush.bf16.msra.mxu0 %v374_v1  ;;  %v377_v13 = vld [vmem:[#allocation2 + $0x48] sm:$0xff]  ;;  %v27_v15 = vld [vmem:[%s448_s0] sm:$0xff]  ;;  %v391_v18 = vld [vmem:[#allocation2 + $0xb8] sm:$0xff] }
   0xb   :  { %174 = vmatpush.bf16.msra.mxu1 %v382_v3  ;;  %v28_v16 = vpack.c.bf16 %v27_v15, %v27_v15  ;;  %v376_v17 = vld [vmem:[#allocation2 + $0x40] sm:$0xff]  ;;  %253 = vmatpush.bf16.msra.mxu2 %v391_v18  ;;  %v390_v19 = vld [vmem:[#allocation2 + $0xb0] sm:$0xff]  ;;  %v389_v20 = vld [vmem:[#allocation2 + $0xa8] sm:$0xff] }
   0xc   :  { %v388_v21 = vld [vmem:[#allocation2 + $0xa0] sm:$0xff]  ;;  %v387_v22 = vld [vmem:[#allocation2 + $0x98] sm:$0xff]  ;;  %v386_v23 = vld [vmem:[#allocation2 + $0x90] sm:$0xff] }
   0xd   :  { %v385_v24 = vld [vmem:[#allocation2 + $0x88] sm:$0xff]  ;;  %v384_v29 = vld [vmem:[#allocation2 + $0x80] sm:$0xff] }
   0xe   :  { %95 = vmatpush.bf16.msra.mxu0 %v373_v4 }
   0xf   :  { %175 = vmatpush.bf16.msra.mxu1 %v381_v5  ;;  %254 = vmatpush.bf16.msra.mxu2 %v390_v19 }
  0x12   :  { %96 = vmatpush.bf16.msra.mxu0 %v372_v6 }
  0x13   :  { %176 = vmatpush.bf16.msra.mxu1 %v380_v7  ;;  %255 = vmatpush.bf16.msra.mxu2 %v389_v20 }
  0x16   :  { %97 = vmatpush.bf16.msra.mxu0 %v371_v8 }
  0x17   :  { %177 = vmatpush.bf16.msra.mxu1 %v379_v9  ;;  %256 = vmatpush.bf16.msra.mxu2 %v388_v21 }
  0x1a   :  { %98 = vmatpush.bf16.msra.mxu0 %v370_v10 }
  0x1b   :  { %178 = vmatpush.bf16.msra.mxu1 %v378_v11  ;;  %257 = vmatpush.bf16.msra.mxu2 %v387_v22 }
  0x1e   :  { %99 = vmatpush.bf16.msra.mxu0 %v369_v12 }
  0x1f   :  { %179 = vmatpush.bf16.msra.mxu1 %v377_v13  ;;  %258 = vmatpush.bf16.msra.mxu2 %v386_v23 }
  0x22   :  { %100 = vmatpush.bf16.msra.mxu0 %v368_v14 }
  0x23   :  { %180 = vmatpush.bf16.msra.mxu1 %v376_v17  ;;  %259 = vmatpush.bf16.msra.mxu2 %v385_v24 }
  0x25   :  { %101 = vmatmul.bf16.vlgmr.msra.gmra.mxu0 %v28_v16 }
  0x27   :  { %260 = vmatpush.bf16.msra.mxu2 %v384_v29 }
  0xa2   :  { %v102_v25 = vpop.f32.mrf.mxu0 }
  0xa3   :  { %v106_v26 = vmax.f32 %v102_v25, 0.0 }
  0xa5   :  { %v107_v27 = vpack.c.bf16 %v106_v26, %v106_v26 }
  0xa7   :  { %181 = vmatmul.bf16.vlgmr.msra.gmra.mxu1 %v107_v27 }
  0xaa   :  { %v104_v28 = vpop.f32.mrf.mxu0 }
 0x124   :  { %v182_v30 = vpop.f32.mrf.mxu1 }
 0x125   :  { %v186_v31 = vmax.f32 %v182_v30, 0.0 }
 0x127   :  { %v187_v32 = vpack.c.bf16 %v186_v31, %v186_v31 }
 0x129   :  { %261 = vmatmul.bf16.vlgmr.msra.gmra.mxu2 %v187_v32 }
 0x12c   :  { %v184_v33 = vpop.f32.mrf.mxu1 }
 0x1ac   :  { %v262_v34 = vpop.f32.mrf.mxu2 }
 0x1ad   :  { %266 = vst [vmem:[%s450_s2] sm:$0xff] %v262_v34 }
 0x1b4   :  { %v264_v35 = vpop.f32.mrf.mxu2 }
 0x1b5   :  { %271 = vsyncpa [#allocation3], 1 }

</bundles_post_ra>
